<compile_context>
chip_gen: v7x
topology: tpu7x:2x2x1
jax: 0.10.0
libtpu: 0.0.40
codegen_flags: <defaults>
</compile_context>

<pallas_src>
import functools

import jax
import jax.numpy as jnp
from jax.experimental import pallas as pl
from jax.experimental.pallas import tpu as pltpu


def _linear_kernel(x_ref, w_ref, b_ref, o_ref, acc_ref):
    """One (tm, tn) output tile; accumulates over the K grid axis (axis 2)."""
    k = pl.program_id(2)

    @pl.when(k == 0)
    def _init():
        # Fold the bias into the accumulator init (saves a full-tile VPU add
        # in the epilogue). b_ref is (1, tn) -> broadcast over tm rows.
        acc_ref[...] = jnp.broadcast_to(
            b_ref[...].astype(jnp.float32), acc_ref.shape
        )

    acc_ref[...] += jnp.dot(
        x_ref[...], w_ref[...], preferred_element_type=jnp.float32
    )

    @pl.when(k == pl.num_programs(2) - 1)
    def _finalize():
        # Pure cast + store epilogue.
        o_ref[...] = acc_ref[...].astype(o_ref.dtype)


def _round_up(x: int, m: int) -> int:
    return ((x + m - 1) // m) * m


def _choose_tile(dim: int, align: int, max_tile: int):
    """Pick a tile (multiple of `align`, <= max_tile) and the padded dim size."""
    padded_min = _round_up(dim, align)
    tile = min(max_tile, padded_min)
    padded = _round_up(dim, tile)
    return tile, padded


@functools.partial(
    jax.jit, static_argnames=("compute_dtype", "tm_max", "tn_max", "tk_max")
)
def linear_forward(
    x: jax.Array,
    W: jax.Array,
    b: jax.Array,
    *,
    compute_dtype=None,   # e.g. jnp.bfloat16 for ~3x MXU / 2x HBM win (changes numerics)
    tm_max: int = 512,
    tn_max: int = 512,
    tk_max: int = 1024,
) -> jax.Array:
    """y = x @ W + b, matching Linear.forward of the reference module."""
    if x.ndim == 1:
        x = x.reshape(1, -1)
    assert x.ndim == 2 and W.ndim == 2 and b.ndim == 1
    M, K = x.shape
    K_w, N = W.shape
    assert K == K_w and b.shape[0] == N

    # Tile sizes: 128-multiples on N/K (MXU lanes), 8-row aligned on M (f32
    # sublane min). Caps are large so per-grid-step overhead amortizes; for
    # small batch tm covers all of M so W streams exactly once (output-
    # stationary reuse of the dominant operand).
    tm, M_pad = _choose_tile(M, 8, tm_max)
    tn, N_pad = _choose_tile(N, 128, tn_max)
    tk, K_pad = _choose_tile(K, 128, tk_max)

    pad_m, pad_k, pad_n = M_pad - M, K_pad - K, N_pad - N

    # Only pad the dims that need it (avoid extra HBM copies when shapes are
    # already tile multiples). Zero K-padding contributes 0 to the dot.
    x_p = jnp.pad(x, ((0, pad_m), (0, pad_k))) if (pad_m or pad_k) else x
    W_p = jnp.pad(W, ((0, pad_k), (0, pad_n))) if (pad_k or pad_n) else W
    b_p = (jnp.pad(b, (0, pad_n)) if pad_n else b).reshape(1, N_pad)

    if compute_dtype is not None:
        x_p = x_p.astype(compute_dtype)
        W_p = W_p.astype(compute_dtype)

    grid = (M_pad // tm, N_pad // tn, K_pad // tk)

    in_bytes = jnp.dtype(x_p.dtype).itemsize
    out_bytes = jnp.dtype(x.dtype).itemsize
    cost = pl.CostEstimate(
        flops=2 * M_pad * K_pad * N_pad,
        bytes_accessed=(
            M_pad * K_pad * in_bytes
            + K_pad * N_pad * in_bytes
            + N_pad * 4
            + M_pad * N_pad * out_bytes
        ),
        transcendentals=0,
    )

    out_p = pl.pallas_call(
        _linear_kernel,
        out_shape=jax.ShapeDtypeStruct((M_pad, N_pad), x.dtype),
        grid_spec=pltpu.PrefetchScalarGridSpec(
            num_scalar_prefetch=0,
            grid=grid,
            in_specs=[
                pl.BlockSpec((tm, tk), lambda i, j, k: (i, k)),   # x tile
                pl.BlockSpec((tk, tn), lambda i, j, k: (k, j)),   # W tile
                pl.BlockSpec((1, tn), lambda i, j, k: (0, j)),    # bias tile
            ],
            out_specs=pl.BlockSpec((tm, tn), lambda i, j, k: (i, j)),
            scratch_shapes=[pltpu.VMEM((tm, tn), jnp.float32)],
        ),
        compiler_params=pltpu.CompilerParams(
            dimension_semantics=("parallel", "parallel", "arbitrary"),
            # Explicit limit: above v5e/v6e scoped defaults (16/32 MiB) so the
            # large double-buffered tiles fit, with headroom under v7x's 64 MiB
            # physical VMEM. Worst-case working set here is ~11 MiB.
            vmem_limit_bytes=48 * 1024 * 1024,
        ),
        cost_estimate=cost,
    )(x_p, W_p, b_p)

    if pad_m or pad_n:
        out_p = out_p[:M, :N]
    return out_p


def _reference_linear(x: jax.Array, W: jax.Array, b: jax.Array) -> jax.Array:
    if x.ndim == 1:
        x = x.reshape(1, -1)
    return x @ W + b


if __name__ == "__main__":
    key = jax.random.PRNGKey(0)
    k_x, k_w, k_b = jax.random.split(key, 3)

    # Small shapes consistent with the module: (batch, in_features) input,
    # W is (in_features, out_features), b is (out_features,).
    batch, in_features, out_features = 8, 32, 64
    x = jax.random.normal(k_x, (batch, in_features), dtype=jnp.float32)
    W = (
        jax.random.normal(k_w, (in_features, out_features), dtype=jnp.float32)
        * jnp.sqrt(2.0 / in_features)
    )
    b = jax.random.normal(k_b, (out_features,), dtype=jnp.float32)

    y = jax.block_until_ready(linear_forward(x, W, b))
    y_ref = _reference_linear(x, W, b)
    assert y.shape == (batch, out_features)
    assert jnp.allclose(y, y_ref, atol=1e-5, rtol=1e-5), "mismatch vs reference"

    # 1-D input path of the module's forward.
    x_vec = jax.random.normal(key, (in_features,), dtype=jnp.float32)
    y_vec = jax.block_until_ready(linear_forward(x_vec, W, b))
    assert y_vec.shape == (1, out_features)
    assert jnp.allclose(y_vec, _reference_linear(x_vec, W, b), atol=1e-5, rtol=1e-5)

    # Exercise the multi-step K reduction / multi-tile N path (small tile caps
    # so the grid has >1 step per axis) plus padding of non-multiple dims.
    k1, k2, k3 = jax.random.split(jax.random.PRNGKey(1), 3)
    M2, K2, N2 = 13, 300, 200
    x2 = jax.random.normal(k1, (M2, K2), dtype=jnp.float32)
    W2 = jax.random.normal(k2, (K2, N2), dtype=jnp.float32) * jnp.sqrt(2.0 / K2)
    b2 = jax.random.normal(k3, (N2,), dtype=jnp.float32)
    y2 = jax.block_until_ready(
        linear_forward(x2, W2, b2, tm_max=8, tn_max=128, tk_max=128)
    )
    assert y2.shape == (M2, N2)
    assert jnp.allclose(y2, _reference_linear(x2, W2, b2), atol=1e-4, rtol=1e-4)

    # TODO(synk): backward() / update() are training-time methods, not part of
    # the forward pass; only forward is implemented as a kernel.
    print("KERNEL_OK")
</pallas_src>

<mosaic_0001>
module attributes {stable_mosaic.version = 11 : i64} {
  func.func @_linear_kernel(%arg0: i32, %arg1: i32, %arg2: i32, %arg3: memref<8x128xf32, #tpu.memory_space<vmem>>, %arg4: memref<128x128xf32, #tpu.memory_space<vmem>>, %arg5: memref<1x128xf32, #tpu.memory_space<vmem>>, %arg6: memref<8x128xf32, #tpu.memory_space<vmem>>, %arg7: memref<8x128xf32, #tpu.memory_space<vmem>>) attributes {dimension_semantics = [#tpu.dimension_semantics<parallel>, #tpu.dimension_semantics<parallel>, #tpu.dimension_semantics<arbitrary>], iteration_bounds = array<i64: 1, 1, 1>, scalar_prefetch = 0 : i64, scratch_operands = 1 : i64, tpu.core_type = #tpu.core_type<tc>, window_params = [{transform_indices = @transform_0, window_bounds = array<i64: 8, 128>}, {transform_indices = @transform_1, window_bounds = array<i64: 128, 128>}, {transform_indices = @transform_2, window_bounds = array<i64: 1, 128>}, {transform_indices = @transform_3, window_bounds = array<i64: 8, 128>}]} {
    %c0_i32 = arith.constant 0 : i32
    %0 = arith.cmpi eq, %arg2, %c0_i32 : i32
    %1 = arith.extui %0 : i1 to i32
    %c0_i32_0 = arith.constant 0 : i32
    %2 = arith.cmpi ne, %1, %c0_i32_0 : i32
    scf.if %2 {
      %c0_10 = arith.constant 0 : index
      %c0_11 = arith.constant 0 : index
      %12 = vector.load %arg5[%c0_10, %c0_11] : memref<1x128xf32, #tpu.memory_space<vmem>>, vector<1x128xf32>
      %13 = vector.shape_cast %12 : vector<1x128xf32> to vector<1x128xf32>
      %14 = vector.broadcast %13 : vector<1x128xf32> to vector<8x128xf32>
      %c0_12 = arith.constant 0 : index
      %c0_13 = arith.constant 0 : index
      %15 = vector.load %arg7[%c0_12, %c0_13] : memref<8x128xf32, #tpu.memory_space<vmem>>, vector<8x128xf32>
      tpu.vector_store %arg7[%c0_12, %c0_13], %14 {strides = array<i32>} : memref<8x128xf32, #tpu.memory_space<vmem>>, vector<8x128xf32>,
    } else {
    }
    %c0 = arith.constant 0 : index
    %c0_1 = arith.constant 0 : index
    %3 = vector.load %arg7[%c0, %c0_1] : memref<8x128xf32, #tpu.memory_space<vmem>>, vector<8x128xf32>
    %c0_2 = arith.constant 0 : index
    %c0_3 = arith.constant 0 : index
    %4 = vector.load %arg3[%c0_2, %c0_3] : memref<8x128xf32, #tpu.memory_space<vmem>>, vector<8x128xf32>
    %c0_4 = arith.constant 0 : index
    %c0_5 = arith.constant 0 : index
    %5 = vector.load %arg4[%c0_4, %c0_5] : memref<128x128xf32, #tpu.memory_space<vmem>>, vector<128x128xf32>
    %cst = arith.constant dense<0.000000e+00> : vector<8x128xf32>
    %6 = tpu.matmul %4, %5, %cst {dimension_numbers = #tpu.dot_dimension_numbers<[1], [0], [0], [1], [0, 0, 1, 1], [], []>} : vector<8x128xf32>, vector<128x128xf32>, vector<8x128xf32> -> vector<8x128xf32>
    %7 = arith.addf %3, %6 : vector<8x128xf32>
    %c0_6 = arith.constant 0 : index
    %c0_7 = arith.constant 0 : index
    %8 = vector.load %arg7[%c0_6, %c0_7] : memref<8x128xf32, #tpu.memory_space<vmem>>, vector<8x128xf32>
    tpu.vector_store %arg7[%c0_6, %c0_7], %7 {strides = array<i32>} : memref<8x128xf32, #tpu.memory_space<vmem>>, vector<8x128xf32>,
    %c0_i32_8 = arith.constant 0 : i32
    %9 = arith.cmpi eq, %arg2, %c0_i32_8 : i32
    %10 = arith.extui %9 : i1 to i32
    %c0_i32_9 = arith.constant 0 : i32
    %11 = arith.cmpi ne, %10, %c0_i32_9 : i32
    scf.if %11 {
      %c0_10 = arith.constant 0 : index
      %c0_11 = arith.constant 0 : index
      %12 = vector.load %arg7[%c0_10, %c0_11] : memref<8x128xf32, #tpu.memory_space<vmem>>, vector<8x128xf32>
      %c0_12 = arith.constant 0 : index
      %c0_13 = arith.constant 0 : index
      %13 = vector.load %arg6[%c0_12, %c0_13] : memref<8x128xf32, #tpu.memory_space<vmem>>, vector<8x128xf32>
      tpu.vector_store %arg6[%c0_12, %c0_13], %12 {strides = array<i32>} : memref<8x128xf32, #tpu.memory_space<vmem>>, vector<8x128xf32>,
    } else {
    }
    return
  }
  func.func @transform_0(%arg0: i32, %arg1: i32, %arg2: i32) -> (i32, i32) {
    %c0_i32 = arith.constant 0 : i32
    return %arg0, %arg2 : i32, i32
  }
  func.func @transform_1(%arg0: i32, %arg1: i32, %arg2: i32) -> (i32, i32) {
    %c0_i32 = arith.constant 0 : i32
    return %arg2, %arg1 : i32, i32
  }
  func.func @transform_2(%arg0: i32, %arg1: i32, %arg2: i32) -> (i32, i32) {
    %c0_i32 = arith.constant 0 : i32
    %c0_i32_0 = arith.constant 0 : i32
    return %c0_i32, %arg1 : i32, i32
  }
  func.func @transform_3(%arg0: i32, %arg1: i32, %arg2: i32) -> (i32, i32) {
    %c0_i32 = arith.constant 0 : i32
    return %arg0, %arg1 : i32, i32
  }
}

</mosaic_0001>

<bundles_post_ra>
// kernel: linear_forward.1
= control target key start
LH: loop header
LB: loop body
LE: loop exit
PB: predicated region body
PF: predicated region fallthrough
CT: control target
= control target key end

     0   :  { %v241_v3 = vmov 0.0|0.0   ;;  %vm242_vm0 = vmmov 0   ;;  %v243_v6 = vmov 0.0   ;;  %s331_s0 = inlined_call_operand.vmem [shape: f32[8,128], index: 0, kind: input, shape index: {}]   ;;  %s332_s1 = inlined_call_operand.vmem [shape: f32[128,128], index: 1, kind: input, shape index: {}]   ;;  %s333_s2 = inlined_call_operand.vmem [shape: f32[1,128], index: 2, kind: input, shape index: {}]   ;;  %s334_s3 = inlined_call_operand.hbm [shape: f32[8,128], index: 3, kind: output, shape index: {}]  }
   0x1   :  { %v29_v0 = vld [vmem:[%s332_s1] sm:$0xff]  ;;  %v30_v1 = vld [vmem:[%s332_s1 + $0x8] sm:$0xff]  ;;  %v31_v2 = vld [vmem:[%s332_s1 + $0x10] sm:$0xff]  ;;  %189 = vmatprep.subr.bf16.mxu0 %v241_v3  ;;  %186 = vmatprep.mubr.msk.f32.mxu0 %vm242_vm0, %v243_v6 }
   0x2   :  { %v190_v4 = vpack.c.bf16 %v30_v1, %v29_v0  ;;  %v32_v5 = vld [vmem:[%s332_s1 + $0x18] sm:$0xff]  ;;  %v33_v8 = vld [vmem:[%s332_s1 + $0x20] sm:$0xff]  ;;  %v34_v9 = vld [vmem:[%s332_s1 + $0x28] sm:$0xff] }
   0x3   :  { %v193_v7 = vpack.c.bf16 %v32_v5, %v31_v2 }
   0x4   :  { %191 = vmatpush3.bf16.msra.mxu0 %v190_v4 }
   0x5   :  { %192 = vmatprep.subr.bf16.mxu0 %v241_v3 }
   0x6   :  { %8 = vsyncpa [#allocation4], 0  ;;  %v196_v10 = vpack.c.bf16 %v34_v9, %v33_v8  ;;  %v35_v11 = vld [vmem:[%s332_s1 + $0x30] sm:$0xff]  ;;  %v36_v12 = vld [vmem:[%s332_s1 + $0x38] sm:$0xff]  ;;  %s244_s21 = smov [#allocation3]  }
   0x7   :  { %v199_v13 = vpack.c.bf16 %v36_v12, %v35_v11  ;;  %v37_v14 = vld [vmem:[%s332_s1 + $0x40] sm:$0xff]  ;;  %v38_v15 = vld [vmem:[%s332_s1 + $0x48] sm:$0xff]  ;;  %v39_v17 = vld [vmem:[%s332_s1 + $0x50] sm:$0xff]  ;;  %s128_s22 = sshll.u32 %s244_s21, 4  ;;  %s129_s22 = int_to_ptr.vmem [resolvable:$true] %s128_s22 }
   0x8   :  { %194 = vmatpush3.bf16.msra.mxu0 %v193_v7  ;;  %v202_v16 = vpack.c.bf16 %v38_v15, %v37_v14  ;;  %v40_v18 = vld [vmem:[%s332_s1 + $0x58] sm:$0xff]  ;;  %v41_v20 = vld [vmem:[%s332_s1 + $0x60] sm:$0xff]  ;;  %v42_v21 = vld [vmem:[%s332_s1 + $0x68] sm:$0xff]  ;;  %p222_p1 = scmp.lt.s32.totalorder %s129_s22, %s129_s22 }
   0x9   :  { %195 = vmatprep.subr.bf16.mxu0 %v241_v3  ;;  %v205_v19 = vpack.c.bf16 %v40_v18, %v39_v17  ;;  %v208_v22 = vpack.c.bf16 %v42_v21, %v41_v20  ;;  %v43_v23 = vld [vmem:[%s332_s1 + $0x70] sm:$0xff]  ;;  %v44_v24 = vld [vmem:[%s332_s1 + $0x78] sm:$0xff]  ;;  %v28_v26 = vld [vmem:[%s331_s0] sm:$0xff]  ;;  %s217_s1 = scalar_lea.vmem %s129_s22, 128 }
   0xa   :  { %v211_v25 = vpack.c.bf16 %v44_v24, %v43_v23  ;;  %v136_v27 = vld [vmem:[%s333_s2] ss:$0 sm:$0xff]  ;;  %p218_p0 = scmp.ne.s32.totalorder %s129_s22, %s217_s1  ;;  %p223_p2 = scmp.lt.s32.totalorder %s217_s1, %s217_s1 }
   0xc   :  { %197 = vmatpush3.bf16.msra.mxu0 %v196_v10  ;;  %p224_p3 = por %p223_p2, %p222_p1 }
   0xd   :  { %198 = vmatprep.subr.bf16.mxu0 %v241_v3 }
   0xe   :  { %p225_p4 = pnand %p224_p3, %p218_p0 }
  0x10   :  { %200 = vmatpush3.bf16.msra.mxu0 %v199_v13 }
  0x11   :  { %201 = vmatprep.subr.bf16.mxu0 %v241_v3 }
  0x14   :  { %203 = vmatpush3.bf16.msra.mxu0 %v202_v16 }
  0x15   :  { %204 = vmatprep.subr.bf16.mxu0 %v241_v3 }
  0x18   :  { %206 = vmatpush3.bf16.msra.mxu0 %v205_v19 }
  0x19   :  { %207 = vmatprep.subr.bf16.mxu0 %v241_v3 }
  0x1c   :  { %209 = vmatpush3.bf16.msra.mxu0 %v208_v22 }
  0x1d   :  { %210 = vmatprep.subr.bf16.mxu0 %v241_v3 }
  0x20   :  { %212 = vmatpush3.bf16.msra.mxu0 %v211_v25 }
  0x23   :  { %187 = vmatmul.mubr.f32.vlgmr.msra.gmra.mrb[0].mxu0 %v28_v26 }
  0xf6   :  { %v111_v28 = vpop.f32.mrb[0].mxu0 }
  0xf7   :  { %v115_v29 = vadd.f32 %v136_v27, %v111_v28  ;;  %v188_v30 = vpop.f32.mrb[1].mxu0 }
  0xf9   :  { %121 = vst [vmem:[#allocation3] sm:$0xff] %v115_v29 }
  0xfa   :  { %228 = shalt.err (!%p225_p4)
}
  0xfb   :  { %s229_s24 = scalar_lea.hbm %s334_s3, 128 }
  0xfc   :  { %p230_p5 = scmp.ne.s32.totalorder %s334_s3, %s229_s24  ;;  %p233_p6 = scmp.lt.u32.totalorder %s229_s24, %s334_s3 }
  0xfe   :  { %p235_p7 = pnand %p233_p6, %p230_p5 }
 0x100   :  { %238 = shalt.err (!%p235_p7)
}
 0x101   :  { %131 = dma.vmem_to_hbm [thread:$0]  %s129_s22, 128, %s334_s3, [#allocation4]  }
 0x102   :  { %239 = dma.done.wait [#allocation4], 128  }
 0x103   :  { %240 = vsyncadd [#allocation4], 4294967168 }
 0x104   :  { %135 = vsyncpa [#allocation4], 1 }

</bundles_post_ra>
